<compile_context>
chip_gen: v5e
topology: v5e:2x2
jax: 0.10.0
libtpu: 0.0.40
codegen_flags: <defaults>
</compile_context>

<pallas_src>
import functools

import numpy as np
import jax
import jax.numpy as jnp
from jax import lax
from jax.experimental import pallas as pl
from jax.experimental.pallas import tpu as pltpu

EPS_CHEBY = 1e-7   # self.epsilon in the module
EPS_NORM = 1e-5    # nn.InstanceNorm2d default eps


def _round_up(v, m):
    return ((v + m - 1) // m) * m


def _cheby_kan_kernel(xm_ref, om_ref, x_ref, w_ref, b_ref, o_ref, basis_ref, *,
                      degree, cin_g, ksize, w_pad, dilation, l_in, l_out,
                      r, r_pad, inv_q):
    # Per grid step (g, n):
    #   xm_ref:    (1, l_in)  f32   1.0 at real-image positions of the padded,
    #                               flattened input grid (0 in the halo / lane tail)
    #   om_ref:    (1, l_out) f32   1.0 at the HO*WO valid output positions of the
    #                               (HO, W_pad)-flattened output grid
    #   x_ref:     (1, 1, cin_g, l_in)       f32  zero-padded, flattened group input
    #   w_ref:     (1, K*K, cout_pad, r_pad) bf16 per-tap weights for degrees 1..D
    #   b_ref:     (1, cout_pad, l_out)      f32  exact degree-0 conv (host precomputed)
    #   o_ref:     (1, 1, cout_pad, l_out)
    #   basis_ref: (r_pad, l_in) f32 scratch slab; row (d-1)*cin_g + c holds T_d of
    #              channel c.
    xp = x_ref[0, 0]                                   # (cin_g, L_in) f32
    m = xm_ref[...]                                    # (1, L_in)

    # x -> tanh -> clamp (acos-domain clamp of the torch code).
    t = jnp.clip(jnp.tanh(xp), -1.0 + EPS_CHEBY, 1.0 - EPS_CHEBY)

    # Degree 1..D basis rows written straight into the slab (no concatenate copy).
    # T_0 is seeded with the position mask: halo / tail positions have x == 0
    # exactly, hence t == 0 and T_d == 0 for every d >= 1 there, reproducing the
    # conv's zero padding of the basis.
    basis_ref[pl.ds(0, cin_g), :] = t
    t_pm2, t_pm1 = m, t
    for d in range(2, degree + 1):
        td = 2.0 * t * t_pm1 - t_pm2
        basis_ref[pl.ds((d - 1) * cin_g, cin_g), :] = td
        t_pm2, t_pm1 = t_pm1, td
    if r_pad > r:
        # zero the alignment rows (their weight columns are zero; avoids NaN*0)
        basis_ref[pl.ds(r, r_pad - r), :] = jnp.zeros((r_pad - r, l_in), jnp.float32)

    # Shift-and-matmul convolution: each (kh, kw) tap reads a static lane-offset
    # window of the slab; K*K small MXU matmuls accumulated in f32, seeded with the
    # exact degree-0 bias.
    acc = b_ref[0]                                     # (cout_pad, l_out) f32
    for kh in range(ksize):
        for kw in range(ksize):
            off = (kh * w_pad + kw) * dilation
            rhs = basis_ref[:, pl.ds(off, l_out)].astype(jnp.bfloat16)
            acc = acc + jnp.dot(w_ref[0, kh * ksize + kw], rhs,
                                preferred_element_type=jnp.float32)

    # InstanceNorm2d (affine=False, biased variance, eps=1e-5): statistics per
    # channel over the HO*WO valid output positions (om masks the junk columns of
    # the W_pad-wide output grid; junk columns are stored as exact zeros).
    om = om_ref[...]                                   # (1, l_out)
    mean = jnp.sum(acc * om, axis=1, keepdims=True) * inv_q
    cent = (acc - mean) * om
    var = jnp.sum(cent * cent, axis=1, keepdims=True) * inv_q
    o_ref[0, 0] = (cent * lax.rsqrt(var + EPS_NORM)).astype(o_ref.dtype)


def cheby_kan_conv2d(x, weights, *, degree, kernel_size, groups,
                     padding=0, stride=1, dilation=1):
    """x: (N, Cin, H, W) f32; weights: list of G arrays (Cout_g, Cin_g*(degree+1), K, K)."""
    # TODO(synk): stride > 1 not supported by the fused shift-conv path (module default is 1).
    assert stride == 1, "Pallas ChebyKAN conv kernel supports stride=1"
    assert degree >= 1
    N, Cin, H, W = x.shape
    K = kernel_size
    G = groups
    cin_g = Cin // G
    cout_g = weights[0].shape[0]
    cout_pad = _round_up(cout_g, 8)                 # unmasked (8,128) output tiles
    HO = H + 2 * padding - dilation * (K - 1)
    WO = W + 2 * padding - dilation * (K - 1)
    H_pad, W_pad = H + 2 * padding, W + 2 * padding
    HWp = H_pad * W_pad
    Q = HO * WO
    QO = HO * W_pad                                 # output grid keeps the padded width
    L_out = _round_up(QO, 128)                      # lane-dense output stores
    off_max = (K - 1) * dilation * (W_pad + 1)      # largest tap offset
    L_in = _round_up(off_max + L_out, 128)          # all tap windows stay in range
    R = degree * cin_g                              # slab rows for degrees 1..D
    R_pad = _round_up(R, 8)

    f32 = jnp.float32
    # ---- group input: pure reshape (channel index is group-major), zero-pad
    # spatially, flatten with the padded width, zero-pad lanes to L_in.
    x_g = x.reshape(N, G, cin_g, H, W).astype(f32)
    x_p = jnp.pad(x_g, ((0, 0), (0, 0), (0, 0),
                        (padding, padding), (padding, padding)))
    x_in = jnp.pad(x_p.reshape(N, G, cin_g, HWp),
                   ((0, 0), (0, 0), (0, 0), (0, L_in - HWp)))

    # ---- tiny position-only masks (constant index_map -> DMA'd once)
    xm = jnp.pad(jnp.pad(jnp.ones((H, W), f32),
                         ((padding, padding), (padding, padding))).reshape(1, HWp),
                 ((0, 0), (0, L_in - HWp)))
    om = jnp.pad(jnp.pad(jnp.ones((HO, WO), f32),
                         ((0, 0), (0, W_pad - WO))).reshape(1, QO),
                 ((0, 0), (0, L_out - QO)))

    # ---- weights: torch layout w[g][o, c*(degree+1)+d, kh, kw]
    w_all = jnp.stack(weights, axis=0).astype(f32)              # (G, O, cin_g*(D+1), K, K)
    w_all = w_all.reshape(G, cout_g, cin_g, degree + 1, K, K)

    # degree-0 term (T_0 == 1) -> exact f32 host bias: conv of an all-ones image with
    # the degree-0 weights and zero padding, laid out on the (HO, W_pad) output grid.
    ones_img = jnp.ones((1, cin_g, H, W), f32)
    b0 = jnp.concatenate([
        lax.conv_general_dilated(
            ones_img, w_all[g, :, :, 0], window_strides=(1, 1),
            padding=((padding, padding), (padding, padding)),
            rhs_dilation=(dilation, dilation),
            dimension_numbers=("NCHW", "OIHW", "NCHW"))
        for g in range(G)], axis=0)                              # (G, cout_g, HO, WO)
    bias = jnp.zeros((G, cout_pad, HO, W_pad), f32).at[:, :cout_g, :, :WO].set(b0)
    bias = jnp.pad(bias.reshape(G, cout_pad, QO),
                   ((0, 0), (0, 0), (0, L_out - QO)))

    # per-tap weights for degrees 1..D; contraction row r = (d-1)*cin_g + c
    w_taps = jnp.transpose(w_all[:, :, :, 1:], (0, 4, 5, 1, 3, 2))  # (G,kh,kw,O,D,cin_g)
    w_taps = w_taps.reshape(G, K * K, cout_g, R)
    w_taps = jnp.pad(w_taps, ((0, 0), (0, 0), (0, cout_pad - cout_g),
                              (0, R_pad - R))).astype(jnp.bfloat16)

    kernel = functools.partial(
        _cheby_kan_kernel, degree=degree, cin_g=cin_g, ksize=K, w_pad=W_pad,
        dilation=dilation, l_in=L_in, l_out=L_out, r=R, r_pad=R_pad, inv_q=1.0 / Q)

    out = pl.pallas_call(
        kernel,
        out_shape=jax.ShapeDtypeStruct((N, G, cout_pad, L_out), f32),
        grid_spec=pltpu.PrefetchScalarGridSpec(
            num_scalar_prefetch=0,
            grid=(G, N),   # n innermost: weight/bias/mask blocks stay resident across n
            in_specs=[
                pl.BlockSpec((1, L_in), lambda g, n: (0, 0)),
                pl.BlockSpec((1, L_out), lambda g, n: (0, 0)),
                pl.BlockSpec((1, 1, cin_g, L_in), lambda g, n: (n, g, 0, 0)),
                pl.BlockSpec((1, K * K, cout_pad, R_pad), lambda g, n: (g, 0, 0, 0)),
                pl.BlockSpec((1, cout_pad, L_out), lambda g, n: (g, 0, 0)),
            ],
            out_specs=pl.BlockSpec((1, 1, cout_pad, L_out), lambda g, n: (n, g, 0, 0)),
            scratch_shapes=[pltpu.VMEM((R_pad, L_in), jnp.float32)],
        ),
        compiler_params=pltpu.CompilerParams(
            dimension_semantics=("parallel", "parallel"),
            # small per-step working set here; keep <= ~48 MiB if Q tiles grow (v7x)
            vmem_limit_bytes=48 * 1024 * 1024),
    )(xm, om, x_in, w_taps, bias)

    # (N, G, cout_pad, L_out) -> drop lane tail, junk width columns, padded channels
    out = out[..., :QO].reshape(N, G, cout_pad, HO, W_pad)[:, :, :cout_g, :, :WO]
    return out.reshape(N, G * cout_g, HO, WO)
    # TODO(synk): dropout > 0 (Dropout2d) is not implemented; module default path uses dropout=0.


def reference_forward(x, weights, *, degree, kernel_size, groups,
                      padding=0, stride=1, dilation=1):
    """Pure-JAX mirror of the PyTorch forward (acos/cos path) for validation."""
    N, Cin, H, W = x.shape
    cin_g = Cin // groups
    arange = jnp.arange(degree + 1, dtype=x.dtype).reshape(1, 1, degree + 1, 1, 1)
    outs = []
    for g in range(groups):
        xgrp = x[:, g * cin_g:(g + 1) * cin_g]
        t = jnp.tanh(xgrp)[:, :, None]                                   # (N,Cin_g,1,H,W)
        a = jnp.arccos(jnp.clip(t, -1.0 + EPS_CHEBY, 1.0 - EPS_CHEBY))
        basis = jnp.cos(a * arange).reshape(N, cin_g * (degree + 1), H, W)
        y = lax.conv_general_dilated(
            basis, weights[g], window_strides=(stride, stride),
            padding=((padding, padding), (padding, padding)),
            rhs_dilation=(dilation, dilation),
            dimension_numbers=("NCHW", "OIHW", "NCHW"))
        mean = jnp.mean(y, axis=(2, 3), keepdims=True)
        var = jnp.mean((y - mean) ** 2, axis=(2, 3), keepdims=True)
        outs.append((y - mean) / jnp.sqrt(var + EPS_NORM))
    return jnp.concatenate(outs, axis=1)


if __name__ == "__main__":
    # small config consistent with the module
    N, input_dim, output_dim = 2, 4, 8
    degree, K, groups = 3, 3, 2
    padding, stride, dilation = 1, 1, 1
    H = W = 16
    cin_g = input_dim // groups
    cout_g = output_dim // groups

    key = jax.random.PRNGKey(0)
    kx, *kws = jax.random.split(key, 1 + groups)
    x = jax.random.normal(kx, (N, input_dim, H, W), jnp.float32)

    # deterministic init matching kaiming_normal_(fan_in, relu): std = sqrt(2 / fan_in)
    fan_in = cin_g * (degree + 1) * K * K
    std = (2.0 / fan_in) ** 0.5
    weights = [std * jax.random.normal(kws[g],
                                       (cout_g, cin_g * (degree + 1), K, K),
                                       jnp.float32)
               for g in range(groups)]

    out = cheby_kan_conv2d(x, weights, degree=degree, kernel_size=K, groups=groups,
                           padding=padding, stride=stride, dilation=dilation)
    out = jax.block_until_ready(out)

    ref = reference_forward(x, weights, degree=degree, kernel_size=K, groups=groups,
                            padding=padding, stride=stride, dilation=dilation)
    assert out.shape == (N, output_dim, H, W)
    # bf16 MXU inputs for degrees >= 1 (f32 accumulation, exact f32 degree-0 term)
    # slightly loosen the tolerance vs the f32 reference.
    np.testing.assert_allclose(np.asarray(out), np.asarray(ref), atol=2e-2, rtol=2e-2)
    print("KERNEL_OK")
</pallas_src>

<mosaic_0001>
module attributes {stable_mosaic.version = 11 : i64} {
  func.func @_cheby_kan_kernel(%arg0: i32, %arg1: i32, %arg2: memref<1x512xf32, #tpu.memory_space<vmem>>, %arg3: memref<1x384xf32, #tpu.memory_space<vmem>>, %arg4: memref<1x1x2x512xf32, #tpu.memory_space<vmem>>, %arg5: memref<1x9x8x8xbf16, #tpu.memory_space<vmem>>, %arg6: memref<1x8x384xf32, #tpu.memory_space<vmem>>, %arg7: memref<1x1x8x384xf32, #tpu.memory_space<vmem>>, %arg8: memref<8x512xf32, #tpu.memory_space<vmem>>) attributes {dimension_semantics = [#tpu.dimension_semantics<parallel>, #tpu.dimension_semantics<parallel>], iteration_bounds = array<i64: 2, 2>, scalar_prefetch = 0 : i64, scratch_operands = 1 : i64, tpu.core_type = #tpu.core_type<tc>, window_params = [{pipeline_mode = #tpu.pipeline_mode<synchronous>, transform_indices = @transform_0, window_bounds = array<i64: 1, 512>}, {pipeline_mode = #tpu.pipeline_mode<synchronous>, transform_indices = @transform_1, window_bounds = array<i64: 1, 384>}, {transform_indices = @transform_2, window_bounds = array<i64: 1, 1, 2, 512>}, {transform_indices = @transform_3, window_bounds = array<i64: 1, 9, 8, 8>}, {transform_indices = @transform_4, window_bounds = array<i64: 1, 8, 384>}, {transform_indices = @transform_5, window_bounds = array<i64: 1, 1, 8, 384>}]} {
    %c0 = arith.constant 0 : index
    %c0_0 = arith.constant 0 : index
    %c0_1 = arith.constant 0 : index
    %c0_2 = arith.constant 0 : index
    %0 = vector.load %arg4[%c0, %c0_0, %c0_1, %c0_2] : memref<1x1x2x512xf32, #tpu.memory_space<vmem>>, vector<1x1x2x512xf32>
    %1 = vector.shape_cast %0 : vector<1x1x2x512xf32> to vector<2x512xf32>
    %c0_3 = arith.constant 0 : index
    %c0_4 = arith.constant 0 : index
    %2 = vector.load %arg2[%c0_3, %c0_4] : memref<1x512xf32, #tpu.memory_space<vmem>>, vector<1x512xf32>
    %3 = math.tanh %1 : vector<2x512xf32>
    %cst = arith.constant -0.99999988 : f32
    %cst_5 = arith.constant 0.99999988 : f32
    %4 = vector.broadcast %cst : f32 to vector<2x512xf32>
    %5 = arith.maximumf %4, %3 : vector<2x512xf32>
    %6 = vector.broadcast %cst_5 : f32 to vector<2x512xf32>
    %7 = arith.minimumf %6, %5 : vector<2x512xf32>
    %c0_6 = arith.constant 0 : index
    %c0_7 = arith.constant 0 : index
    %8 = vector.load %arg8[%c0_6, %c0_7] : memref<8x512xf32, #tpu.memory_space<vmem>>, vector<2x512xf32>
    tpu.vector_store %arg8[%c0_6, %c0_7], %7 {strides = array<i32>} : memref<8x512xf32, #tpu.memory_space<vmem>>, vector<2x512xf32>,
    %cst_8 = arith.constant 2.000000e+00 : f32
    %9 = vector.broadcast %cst_8 : f32 to vector<2x512xf32>
    %10 = arith.mulf %9, %7 : vector<2x512xf32>
    %11 = arith.mulf %10, %7 : vector<2x512xf32>
    %12 = vector.broadcast %2 : vector<1x512xf32> to vector<2x512xf32>
    %13 = arith.subf %11, %12 : vector<2x512xf32>
    %c2 = arith.constant 2 : index
    %c0_9 = arith.constant 0 : index
    %14 = vector.load %arg8[%c2, %c0_9] : memref<8x512xf32, #tpu.memory_space<vmem>>, vector<2x512xf32>
    tpu.vector_store %arg8[%c2, %c0_9], %13 {strides = array<i32>} : memref<8x512xf32, #tpu.memory_space<vmem>>, vector<2x512xf32>,
    %cst_10 = arith.constant 2.000000e+00 : f32
    %15 = vector.broadcast %cst_10 : f32 to vector<2x512xf32>
    %16 = arith.mulf %15, %7 : vector<2x512xf32>
    %17 = arith.mulf %16, %13 : vector<2x512xf32>
    %18 = arith.subf %17, %7 : vector<2x512xf32>
    %c4 = arith.constant 4 : index
    %c0_11 = arith.constant 0 : index
    %19 = vector.load %arg8[%c4, %c0_11] : memref<8x512xf32, #tpu.memory_space<vmem>>, vector<2x512xf32>
    tpu.vector_store %arg8[%c4, %c0_11], %18 {strides = array<i32>} : memref<8x512xf32, #tpu.memory_space<vmem>>, vector<2x512xf32>,
    %cst_12 = arith.constant 0.000000e+00 : f32
    %20 = vector.broadcast %cst_12 : f32 to vector<2x512xf32>
    %c6 = arith.constant 6 : index
    %c0_13 = arith.constant 0 : index
    %21 = vector.load %arg8[%c6, %c0_13] : memref<8x512xf32, #tpu.memory_space<vmem>>, vector<2x512xf32>
    tpu.vector_store %arg8[%c6, %c0_13], %20 {strides = array<i32>} : memref<8x512xf32, #tpu.memory_space<vmem>>, vector<2x512xf32>,
    %c0_14 = arith.constant 0 : index
    %c0_15 = arith.constant 0 : index
    %c0_16 = arith.constant 0 : index
    %22 = vector.load %arg6[%c0_14, %c0_15, %c0_16] : memref<1x8x384xf32, #tpu.memory_space<vmem>>, vector<1x8x384xf32>
    %23 = vector.shape_cast %22 : vector<1x8x384xf32> to vector<8x384xf32>
    %c0_17 = arith.constant 0 : index
    %c0_18 = arith.constant 0 : index
    %24 = vector.load %arg8[%c0_17, %c0_18] : memref<8x512xf32, #tpu.memory_space<vmem>>, vector<8x384xf32>
    %25 = arith.truncf %24 : vector<8x384xf32> to vector<8x384xbf16>
    %c0_19 = arith.constant 0 : index
    %c0_20 = arith.constant 0 : index
    %c0_21 = arith.constant 0 : index
    %c0_22 = arith.constant 0 : index
    %26 = vector.load %arg5[%c0_19, %c0_20, %c0_21, %c0_22] : memref<1x9x8x8xbf16, #tpu.memory_space<vmem>>, vector<1x1x8x8xbf16>
    %27 = vector.shape_cast %26 : vector<1x1x8x8xbf16> to vector<8x8xbf16>
    %cst_23 = arith.constant dense<0.000000e+00> : vector<8x384xf32>
    %28 = tpu.matmul %27, %25, %cst_23 {dimension_numbers = #tpu.dot_dimension_numbers<[1], [0], [0], [1], [0, 0, 1, 1], [], []>} : vector<8x8xbf16>, vector<8x384xbf16>, vector<8x384xf32> -> vector<8x384xf32>
    %29 = arith.addf %23, %28 : vector<8x384xf32>
    %c0_24 = arith.constant 0 : index
    %c1 = arith.constant 1 : index
    %30 = vector.load %arg8[%c0_24, %c1] : memref<8x512xf32, #tpu.memory_space<vmem>>, vector<8x384xf32>
    %31 = arith.truncf %30 : vector<8x384xf32> to vector<8x384xbf16>
    %c0_25 = arith.constant 0 : index
    %c1_26 = arith.constant 1 : index
    %c0_27 = arith.constant 0 : index
    %c0_28 = arith.constant 0 : index
    %32 = vector.load %arg5[%c0_25, %c1_26, %c0_27, %c0_28] : memref<1x9x8x8xbf16, #tpu.memory_space<vmem>>, vector<1x1x8x8xbf16>
    %33 = vector.shape_cast %32 : vector<1x1x8x8xbf16> to vector<8x8xbf16>
    %cst_29 = arith.constant dense<0.000000e+00> : vector<8x384xf32>
    %34 = tpu.matmul %33, %31, %cst_29 {dimension_numbers = #tpu.dot_dimension_numbers<[1], [0], [0], [1], [0, 0, 1, 1], [], []>} : vector<8x8xbf16>, vector<8x384xbf16>, vector<8x384xf32> -> vector<8x384xf32>
    %35 = arith.addf %29, %34 : vector<8x384xf32>
    %c0_30 = arith.constant 0 : index
    %c2_31 = arith.constant 2 : index
    %36 = vector.load %arg8[%c0_30, %c2_31] : memref<8x512xf32, #tpu.memory_space<vmem>>, vector<8x384xf32>
    %37 = arith.truncf %36 : vector<8x384xf32> to vector<8x384xbf16>
    %c0_32 = arith.constant 0 : index
    %c2_33 = arith.constant 2 : index
    %c0_34 = arith.constant 0 : index
    %c0_35 = arith.constant 0 : index
    %38 = vector.load %arg5[%c0_32, %c2_33, %c0_34, %c0_35] : memref<1x9x8x8xbf16, #tpu.memory_space<vmem>>, vector<1x1x8x8xbf16>
    %39 = vector.shape_cast %38 : vector<1x1x8x8xbf16> to vector<8x8xbf16>
    %cst_36 = arith.constant dense<0.000000e+00> : vector<8x384xf32>
    %40 = tpu.matmul %39, %37, %cst_36 {dimension_numbers = #tpu.dot_dimension_numbers<[1], [0], [0], [1], [0, 0, 1, 1], [], []>} : vector<8x8xbf16>, vector<8x384xbf16>, vector<8x384xf32> -> vector<8x384xf32>
    %41 = arith.addf %35, %40 : vector<8x384xf32>
    %c0_37 = arith.constant 0 : index
    %c18 = arith.constant 18 : index
    %42 = vector.load %arg8[%c0_37, %c18] : memref<8x512xf32, #tpu.memory_space<vmem>>, vector<8x384xf32>
    %43 = arith.truncf %42 : vector<8x384xf32> to vector<8x384xbf16>
    %c0_38 = arith.constant 0 : index
    %c3 = arith.constant 3 : index
    %c0_39 = arith.constant 0 : index
    %c0_40 = arith.constant 0 : index
    %44 = vector.load %arg5[%c0_38, %c3, %c0_39, %c0_40] : memref<1x9x8x8xbf16, #tpu.memory_space<vmem>>, vector<1x1x8x8xbf16>
    %45 = vector.shape_cast %44 : vector<1x1x8x8xbf16> to vector<8x8xbf16>
    %cst_41 = arith.constant dense<0.000000e+00> : vector<8x384xf32>
    %46 = tpu.matmul %45, %43, %cst_41 {dimension_numbers = #tpu.dot_dimension_numbers<[1], [0], [0], [1], [0, 0, 1, 1], [], []>} : vector<8x8xbf16>, vector<8x384xbf16>, vector<8x384xf32> -> vector<8x384xf32>
    %47 = arith.addf %41, %46 : vector<8x384xf32>
    %c0_42 = arith.constant 0 : index
    %c19 = arith.constant 19 : index
    %48 = vector.load %arg8[%c0_42, %c19] : memref<8x512xf32, #tpu.memory_space<vmem>>, vector<8x384xf32>
    %49 = arith.truncf %48 : vector<8x384xf32> to vector<8x384xbf16>
    %c0_43 = arith.constant 0 : index
    %c4_44 = arith.constant 4 : index
    %c0_45 = arith.constant 0 : index
    %c0_46 = arith.constant 0 : index
    %50 = vector.load %arg5[%c0_43, %c4_44, %c0_45, %c0_46] : memref<1x9x8x8xbf16, #tpu.memory_space<vmem>>, vector<1x1x8x8xbf16>
    %51 = vector.shape_cast %50 : vector<1x1x8x8xbf16> to vector<8x8xbf16>
    %cst_47 = arith.constant dense<0.000000e+00> : vector<8x384xf32>
    %52 = tpu.matmul %51, %49, %cst_47 {dimension_numbers = #tpu.dot_dimension_numbers<[1], [0], [0], [1], [0, 0, 1, 1], [], []>} : vector<8x8xbf16>, vector<8x384xbf16>, vector<8x384xf32> -> vector<8x384xf32>
    %53 = arith.addf %47, %52 : vector<8x384xf32>
    %c0_48 = arith.constant 0 : index
    %c20 = arith.constant 20 : index
    %54 = vector.load %arg8[%c0_48, %c20] : memref<8x512xf32, #tpu.memory_space<vmem>>, vector<8x384xf32>
    %55 = arith.truncf %54 : vector<8x384xf32> to vector<8x384xbf16>
    %c0_49 = arith.constant 0 : index
    %c5 = arith.constant 5 : index
    %c0_50 = arith.constant 0 : index
    %c0_51 = arith.constant 0 : index
    %56 = vector.load %arg5[%c0_49, %c5, %c0_50, %c0_51] : memref<1x9x8x8xbf16, #tpu.memory_space<vmem>>, vector<1x1x8x8xbf16>
    %57 = vector.shape_cast %56 : vector<1x1x8x8xbf16> to vector<8x8xbf16>
    %cst_52 = arith.constant dense<0.000000e+00> : vector<8x384xf32>
    %58 = tpu.matmul %57, %55, %cst_52 {dimension_numbers = #tpu.dot_dimension_numbers<[1], [0], [0], [1], [0, 0, 1, 1], [], []>} : vector<8x8xbf16>, vector<8x384xbf16>, vector<8x384xf32> -> vector<8x384xf32>
    %59 = arith.addf %53, %58 : vector<8x384xf32>
    %c0_53 = arith.constant 0 : index
    %c36 = arith.constant 36 : index
    %60 = vector.load %arg8[%c0_53, %c36] : memref<8x512xf32, #tpu.memory_space<vmem>>, vector<8x384xf32>
    %61 = arith.truncf %60 : vector<8x384xf32> to vector<8x384xbf16>
    %c0_54 = arith.constant 0 : index
    %c6_55 = arith.constant 6 : index
    %c0_56 = arith.constant 0 : index
    %c0_57 = arith.constant 0 : index
    %62 = vector.load %arg5[%c0_54, %c6_55, %c0_56, %c0_57] : memref<1x9x8x8xbf16, #tpu.memory_space<vmem>>, vector<1x1x8x8xbf16>
    %63 = vector.shape_cast %62 : vector<1x1x8x8xbf16> to vector<8x8xbf16>
    %cst_58 = arith.constant dense<0.000000e+00> : vector<8x384xf32>
    %64 = tpu.matmul %63, %61, %cst_58 {dimension_numbers = #tpu.dot_dimension_numbers<[1], [0], [0], [1], [0, 0, 1, 1], [], []>} : vector<8x8xbf16>, vector<8x384xbf16>, vector<8x384xf32> -> vector<8x384xf32>
    %65 = arith.addf %59, %64 : vector<8x384xf32>
    %c0_59 = arith.constant 0 : index
    %c37 = arith.constant 37 : index
    %66 = vector.load %arg8[%c0_59, %c37] : memref<8x512xf32, #tpu.memory_space<vmem>>, vector<8x384xf32>
    %67 = arith.truncf %66 : vector<8x384xf32> to vector<8x384xbf16>
    %c0_60 = arith.constant 0 : index
    %c7 = arith.constant 7 : index
    %c0_61 = arith.constant 0 : index
    %c0_62 = arith.constant 0 : index
    %68 = vector.load %arg5[%c0_60, %c7, %c0_61, %c0_62] : memref<1x9x8x8xbf16, #tpu.memory_space<vmem>>, vector<1x1x8x8xbf16>
    %69 = vector.shape_cast %68 : vector<1x1x8x8xbf16> to vector<8x8xbf16>
    %cst_63 = arith.constant dense<0.000000e+00> : vector<8x384xf32>
    %70 = tpu.matmul %69, %67, %cst_63 {dimension_numbers = #tpu.dot_dimension_numbers<[1], [0], [0], [1], [0, 0, 1, 1], [], []>} : vector<8x8xbf16>, vector<8x384xbf16>, vector<8x384xf32> -> vector<8x384xf32>
    %71 = arith.addf %65, %70 : vector<8x384xf32>
    %c0_64 = arith.constant 0 : index
    %c38 = arith.constant 38 : index
    %72 = vector.load %arg8[%c0_64, %c38] : memref<8x512xf32, #tpu.memory_space<vmem>>, vector<8x384xf32>
    %73 = arith.truncf %72 : vector<8x384xf32> to vector<8x384xbf16>
    %c0_65 = arith.constant 0 : index
    %c8 = arith.constant 8 : index
    %c0_66 = arith.constant 0 : index
    %c0_67 = arith.constant 0 : index
    %74 = vector.load %arg5[%c0_65, %c8, %c0_66, %c0_67] : memref<1x9x8x8xbf16, #tpu.memory_space<vmem>>, vector<1x1x8x8xbf16>
    %75 = vector.shape_cast %74 : vector<1x1x8x8xbf16> to vector<8x8xbf16>
    %cst_68 = arith.constant dense<0.000000e+00> : vector<8x384xf32>
    %76 = tpu.matmul %75, %73, %cst_68 {dimension_numbers = #tpu.dot_dimension_numbers<[1], [0], [0], [1], [0, 0, 1, 1], [], []>} : vector<8x8xbf16>, vector<8x384xbf16>, vector<8x384xf32> -> vector<8x384xf32>
    %77 = arith.addf %71, %76 : vector<8x384xf32>
    %c0_69 = arith.constant 0 : index
    %c0_70 = arith.constant 0 : index
    %78 = vector.load %arg3[%c0_69, %c0_70] : memref<1x384xf32, #tpu.memory_space<vmem>>, vector<1x384xf32>
    %79 = vector.broadcast %78 : vector<1x384xf32> to vector<8x384xf32>
    %80 = arith.mulf %77, %79 : vector<8x384xf32>
    %cst_71 = arith.constant dense<0.000000e+00> : vector<8xf32>
    %81 = vector.multi_reduction <add>, %80, %cst_71 [1] : vector<8x384xf32> to vector<8xf32>
    %82 = vector.shape_cast %81 : vector<8xf32> to vector<8x1xf32>
    %cst_72 = arith.constant 3.906250e-03 : f32
    %83 = vector.broadcast %cst_72 : f32 to vector<8x1xf32>
    %84 = arith.mulf %82, %83 : vector<8x1xf32>
    %85 = vector.broadcast %84 : vector<8x1xf32> to vector<8x384xf32>
    %86 = arith.subf %77, %85 : vector<8x384xf32>
    %87 = vector.broadcast %78 : vector<1x384xf32> to vector<8x384xf32>
    %88 = arith.mulf %86, %87 : vector<8x384xf32>
    %89 = arith.mulf %88, %88 : vector<8x384xf32>
    %cst_73 = arith.constant dense<0.000000e+00> : vector<8xf32>
    %90 = vector.multi_reduction <add>, %89, %cst_73 [1] : vector<8x384xf32> to vector<8xf32>
    %91 = vector.shape_cast %90 : vector<8xf32> to vector<8x1xf32>
    %cst_74 = arith.constant 3.906250e-03 : f32
    %92 = vector.broadcast %cst_74 : f32 to vector<8x1xf32>
    %93 = arith.mulf %91, %92 : vector<8x1xf32>
    %cst_75 = arith.constant 9.99999974E-6 : f32
    %94 = vector.broadcast %cst_75 : f32 to vector<8x1xf32>
    %95 = arith.addf %93, %94 : vector<8x1xf32>
    %96 = math.rsqrt %95 : vector<8x1xf32>
    %97 = vector.broadcast %96 : vector<8x1xf32> to vector<8x384xf32>
    %98 = arith.mulf %88, %97 : vector<8x384xf32>
    %c0_76 = arith.constant 0 : index
    %c0_77 = arith.constant 0 : index
    %c0_78 = arith.constant 0 : index
    %c0_79 = arith.constant 0 : index
    %99 = vector.load %arg7[%c0_76, %c0_77, %c0_78, %c0_79] : memref<1x1x8x384xf32, #tpu.memory_space<vmem>>, vector<1x1x8x384xf32>
    %100 = vector.shape_cast %99 : vector<1x1x8x384xf32> to vector<8x384xf32>
    %101 = vector.shape_cast %98 : vector<8x384xf32> to vector<1x1x8x384xf32>
    tpu.vector_store %arg7[%c0_76, %c0_77, %c0_78, %c0_79], %101 {strides = array<i32>} : memref<1x1x8x384xf32, #tpu.memory_space<vmem>>, vector<1x1x8x384xf32>,
    return
  }
  func.func @transform_0(%arg0: i32, %arg1: i32) -> (i32, i32) {
    %c0_i32 = arith.constant 0 : i32
    %c0_i32_0 = arith.constant 0 : i32
    %c0_i32_1 = arith.constant 0 : i32
    return %c0_i32, %c0_i32_0 : i32, i32
  }
  func.func @transform_1(%arg0: i32, %arg1: i32) -> (i32, i32) {
    %c0_i32 = arith.constant 0 : i32
    %c0_i32_0 = arith.constant 0 : i32
    %c0_i32_1 = arith.constant 0 : i32
    return %c0_i32, %c0_i32_0 : i32, i32
  }
  func.func @transform_2(%arg0: i32, %arg1: i32) -> (i32, i32, i32, i32) {
    %c0_i32 = arith.constant 0 : i32
    %c0_i32_0 = arith.constant 0 : i32
    %c0_i32_1 = arith.constant 0 : i32
    return %arg1, %arg0, %c0_i32, %c0_i32_0 : i32, i32, i32, i32
  }
  func.func @transform_3(%arg0: i32, %arg1: i32) -> (i32, i32, i32, i32) {
    %c0_i32 = arith.constant 0 : i32
    %c0_i32_0 = arith.constant 0 : i32
    %c0_i32_1 = arith.constant 0 : i32
    %c0_i32_2 = arith.constant 0 : i32
    return %arg0, %c0_i32, %c0_i32_0, %c0_i32_1 : i32, i32, i32, i32
  }
  func.func @transform_4(%arg0: i32, %arg1: i32) -> (i32, i32, i32) {
    %c0_i32 = arith.constant 0 : i32
    %c0_i32_0 = arith.constant 0 : i32
    %c0_i32_1 = arith.constant 0 : i32
    return %arg0, %c0_i32, %c0_i32_0 : i32, i32, i32
  }
  func.func @transform_5(%arg0: i32, %arg1: i32) -> (i32, i32, i32, i32) {
    %c0_i32 = arith.constant 0 : i32
    %c0_i32_0 = arith.constant 0 : i32
    %c0_i32_1 = arith.constant 0 : i32
    return %arg1, %arg0, %c0_i32, %c0_i32_0 : i32, i32, i32, i32
  }
}

</mosaic_0001>

<bundles_post_ra>
// kernel: tpu_custom_call.1
= control target key start
LH: loop header
LB: loop body
LE: loop exit
PB: predicated region body
PF: predicated region fallthrough
CT: control target
= control target key end

     0   :  { %10 = vsyncpa [#allocation4], 0  ;;  %s1654_s0 = inlined_call_operand.vmem [shape: f32[1,512], index: 0, kind: input, shape index: {}]   ;;  %s1655_s1 = inlined_call_operand.vmem [shape: f32[1,384], index: 1, kind: input, shape index: {}]   ;;  %s1656_s2 = inlined_call_operand.vmem [shape: f32[2,2,2,512], index: 2, kind: input, shape index: {}]   ;;  %s1657_s3 = inlined_call_operand.vmem [shape: bf16[2,9,8,8], index: 3, kind: input, shape index: {}]   ;;  %s1658_s4 = inlined_call_operand.vmem [shape: f32[2,8,384], index: 4, kind: input, shape index: {}]   ;;  %s1659_s5 = inlined_call_operand.hbm [shape: f32[2,2,8,384], index: 5, kind: output, shape index: {}]  }
   0x1   :  { %12 = vsyncpa [#allocation4 + $0x1], 0  ;;  %s1431_s18 = smov 0   ;;  %s1433_s19 = smov 0  }
   0x2   :  { %s1435_s20 = smov 0   ;;  %s1437_s21 = smov 0  }
   0x3   :  { %s1439_s22 = smov 0   ;;  %s1441_s23 = smov 0  }
   0x4   :  { %s1443_s24 = smov 0   ;;  %s1445_s25 = smov 0  }
   0x5 LB: > { %s1158_s26 = sadd.s32 4294967295, %s1390_s25   ;;  %s1159_s27 = sadd.s32 4294967294, %s1390_s25   ;;  %s1390_s25 = sphi %s1445_s25, %s18_s25   ;;  %s1386_s24 = sphi %s1443_s24, %s1668_s24   ;;  %s1382_s23 = sphi %s1441_s23, %s1667_s23   ;;  %s1378_s22 = sphi %s1439_s22, %s1666_s22   ;;  %s1374_s21 = sphi %s1437_s21, %s1665_s21   ;;  %s1370_s20 = sphi %s1435_s20, %s1664_s20   ;;  %s1366_s19 = sphi %s1433_s19, %s1663_s19   ;;  %s1362_s18 = sphi %s1431_s18, %s1662_s18  }
   0x6   : > { %s27_s28 = sadd.s32 1, %s1382_s23  ;;  %s30_s29 = sadd.s32 1, %s1386_s24 }
   0x7   : > { %p28_p0 = scmp.ge.s32.totalorder %s27_s28, 2  ;;  %p171_p1 = scmp.ne.s32.totalorder %s1370_s20, %s1366_s19 }
   0x8   : > { %p172_p2 = scmp.eq.s32.totalorder %s1158_s26, 3  ;;  %p177_p5 = scmp.ne.s32.totalorder %s1366_s19, %s1362_s18 }
   0x9   : > { %s1670_s28 = smov (%p28_p0, %s27_s28), 0  ;;  %s1672_s29 = smov (!%p28_p0, %s30_s29), %s1386_s24 }
   0xa   : > { %s156_s30 = ssub.s32 %s1382_s23, %s1670_s28  ;;  %p1482_p3 = por %p172_p2, %p171_p1 }
   0xb   : > { %p32_p4 = scmp.ge.s32.totalorder %s1672_s29, 2  ;;  %p178_p6 = scmp.eq.s32.totalorder %s1159_s27, 3 }
   0xc   : > { %p1162_p7 = scmp.ge.s32.totalorder %s1390_s25, 1  ;;  %p230_p9 = scmp.lt.s32.totalorder %s1390_s25, 5 }
   0xd   : > { %s1674_s29 = smov (%p32_p4, %s1672_s29), 0  ;;  %p1491_p8 = por %p178_p6, %p177_p5 }
   0xe   : > { %s157_s8 = ssub.s32 %s1386_s24, %s1674_s29  ;;  %s161_s9 = sadd.s32 1, %s1370_s20 }
   0xf   : > { %s158_s10 = sor.u32 %s157_s8, %s156_s30  ;;  %p231_p10 = pnand %p1162_p7, %p230_p9 }
  0x10   : > { %p159_p11 = scmp.eq.s32.totalorder %s158_s10, 0  ;;  %p272_p12 = scmp.lt.s32.totalorder (!%p231_p10), %s1374_s21, 1 }
  0x11   : > { %234 = sbr.rel (%p231_p10) target bundleno = 698 (0x2ba), region = 40  ;;  %p274_p13 = scmp.lt.s32.totalorder (!%p231_p10), %s1378_s22, 1 }
  0x12   : > { %s1500_s11 = scalar_select %p159_p11, %s1370_s20, %s161_s9  }
  0x13   : > { %s1393_s10 = smov (!%p231_p10), 126   ;;  %s1399_s9 = smov (!%p231_p10), 91  }
  0x14   : > { %s1211_s27 = smul.u32 (!%p231_p10), 6, %s1374_s21 }
  0x16   : > { %s273_s12 = scalar_select %p272_p12, %s1374_s21, 1  ;;  %v293_v0 = vld [vmem:[%s1654_s0] sm:$0xf]  ;;  %v1392_v9 = vmov 0.0   ;;  %vm321_vm0 = vcmask 1041408   ;;  %vm323_vm1 = vcmask 1045508  }
  0x17   : > { %s1506_s13 = scalar_select %p274_p13, %s1378_s22, 1  ;;  %v315_v2 = vperm.slane %v293_v0, 1  ;;  %v316_v3 = vperm.slane %v293_v0, 2  ;;  %v317_v4 = vperm.slane %v293_v0, 3  ;;  %v314_v5 = vperm.slane %v293_v0, 0 }
  0x18   : > { %s1164_s14 = sshll.u32 %s273_s12, 3  ;;  %361 = vst [vmem:[#allocation2 + $0x10] sm:$0xc0] %v1392_v9  ;;  %vm325_vm2 = vcmask 1043456   ;;  %s1394_s12 = smov 127   ;;  %vm375_vm3 = vcmask 64512  }
  0x19   : > { %s1163_s15 = sshll.u32 %s1506_s13, 2  ;;  %v318_v6 = vrot.slane %v315_v2, 6  ;;  %v319_v7 = vrot.slane %v316_v3, 4  ;;  %v320_v8 = vrot.slane %v317_v4, 2  ;;  %362 = vst [vmem:[#allocation2] sm:$0xc0] %v1392_v9 }
  0x1a   : > { %s278_s16 = sadd.s32 %s1164_s14, %s1163_s15  ;;  %363 = vst [vmem:[#allocation2 + $0x18] sm:$0xc0] %v1392_v9  ;;  %s1395_s14 = smov 110   ;;  %vm452_vm4 = vcmask 1039360   ;;  %vm520_vm5 = vcmask 1031168   ;;  %vm588_vm6 = vcmask 900096  }
  0x1b   : > { %s1165_s17 = sshll.u32 %s278_s16, 1  ;;  %364 = vst [vmem:[#allocation2 + $0x8] sm:$0xc0] %v1392_v9  ;;  %v322_v13 = vsel %vm321_vm0, %v314_v5, %v318_v6  ;;  %v324_v14 = vsel %vm323_vm1, %v319_v7, %v320_v8  ;;  %s1396_s15 = smov 109   ;;  %vm656_vm7 = vcmask 891904   ;;  %vm724_vm8 = vcmask 883712  }
  0x1c   : > { %s280_s30 = scalar_lea.vmem %s1656_s2, %s1165_s17  ;;  %v326_v16 = vsel %vm325_vm2, %v322_v13, %v324_v14  ;;  %s1397_s16 = smov 108   ;;  %vm792_vm9 = vcmask 752640   ;;  %vm860_vm10 = vcmask 744448   ;;  %vm928_vm11 = vcmask 736256  }
  0x1d   : > { %v292_v1 = vld [vmem:[%s280_s30] sm:$0xff]  ;;  %s1398_s17 = smov 92   ;;  %s1208_s26 = smul.u32 36, %s1506_s13 }
  0x1e   : > { %1292 = vtanh.f32 %v292_v1  ;;  %s269_s30 = sand.u32 1, %s1366_s19  }
  0x1f   : > { %s1522_s8 = scalar_lea.vmem %s1657_s3, %s1208_s26  ;;  %s1210_s26 = smul.u32 3, %s1378_s22 }
  0x20   : > { %v374_v43 = vld [vmem:[%s1522_s8] sm:$0xf]  ;;  %v1172_v48 = vld [vmem:[%s1522_s8 + $0x4] sm:$0xf]  ;;  %v1176_v62 = vld [vmem:[%s1522_s8 + $0x8] sm:$0xf] }
  0x21   : > { %v1180_v14 = vld [vmem:[%s1522_s8 + $0xc] sm:$0xf] }
  0x24   : > { %v1293_v10 = vpop.eup %1292 }
  0x25   : > { %v1168_v11 = vclamps-f32 %v1293_v10, 0.9999999 }
  0x27   : > { %298 = vst [vmem:[#allocation1] ss:$4 sm:$0xff] %v1168_v11  ;;  %v311_v12 = vmul.f32 2.0, %v1168_v11 }
  0x29   : > { %v312_v15 = vmul.f32 %v1168_v11, %v311_v12 }
  0x2b   : > { %v328_v17 = vsub.f32 %v312_v15, %v326_v16 }
  0x2d   : > { %v344_v22 = vmul.f32 %v328_v17, %v311_v12 }
  0x2e   : > { %v299_v18 = vld.sshfl [vmem:[#allocation1] sm:$0xff pattern:$0x73625140]  ;;  %v300_v19 = vld.sshfl [vmem:[#allocation1 + $0x8] sm:$0xff pattern:$0x73625140] }
  0x2f   : > { %v301_v20 = vld.sshfl [vmem:[#allocation1 + $0x10] sm:$0xff pattern:$0x73625140]  ;;  %v302_v21 = vld.sshfl [vmem:[#allocation1 + $0x18] sm:$0xff pattern:$0x73625140]  ;;  %v345_v23 = vsub.f32 %v344_v22, %v1168_v11 }
  0x30   : > { %307 = vst [vmem:[#allocation2 + $0x10] sm:$0x3] %v299_v18 }
  0x31   : > { %331 = vst [vmem:[#allocation1 + $0x1] ss:$4 sm:$0xff] %v328_v17 }
  0x32   : > { %308 = vst [vmem:[#allocation2] sm:$0x3] %v300_v19 }
  0x33   : > { %309 = vst [vmem:[#allocation2 + $0x18] sm:$0x3] %v301_v20 }
  0x34   : > { %310 = vst [vmem:[#allocation2 + $0x8] sm:$0x3] %v302_v21 }
  0x38   : > { %v332_v24 = vld.sshfl [vmem:[#allocation1] sm:$0xff pattern:$0x73625140]  ;;  %v333_v25 = vld.sshfl [vmem:[#allocation1 + $0x8] sm:$0xff pattern:$0x73625140] }
  0x39   : > { %v334_v26 = vld.sshfl [vmem:[#allocation1 + $0x10] sm:$0xff pattern:$0x73625140]  ;;  %v335_v27 = vld.sshfl [vmem:[#allocation1 + $0x18] sm:$0xff pattern:$0x73625140] }
  0x3a   : > { %340 = vst [vmem:[#allocation2 + $0x10] sm:$0xc] %v332_v24 }
  0x3b   : > { %348 = vst [vmem:[#allocation1 + $0x2] ss:$4 sm:$0xff] %v345_v23 }
  0x3c   : > { %341 = vst [vmem:[#allocation2] sm:$0xc] %v333_v25 }
  0x3d   : > { %342 = vst [vmem:[#allocation2 + $0x18] sm:$0xc] %v334_v26 }
  0x3e   : > { %343 = vst [vmem:[#allocation2 + $0x8] sm:$0xc] %v335_v27 }
  0x42   : > { %v349_v28 = vld.sshfl [vmem:[#allocation1] sm:$0xff pattern:$0x73625140]  ;;  %v350_v29 = vld.sshfl [vmem:[#allocation1 + $0x8] sm:$0xff pattern:$0x73625140] }
  0x43   : > { %357 = vst [vmem:[#allocation2 + $0x10] sm:$0x30] %v349_v28  ;;  %v351_v30 = vld.sshfl [vmem:[#allocation1 + $0x10] sm:$0xff pattern:$0x73625140] }
  0x44   : > { %358 = vst [vmem:[#allocation2] sm:$0x30] %v350_v29  ;;  %v352_v31 = vld.sshfl [vmem:[#allocation1 + $0x18] sm:$0xff pattern:$0x73625140] }
  0x45   : > { %359 = vst [vmem:[#allocation2 + $0x18] sm:$0x30] %v351_v30 }
  0x46   : > { %360 = vst [vmem:[#allocation2 + $0x8] sm:$0x30] %v352_v31  ;;  %v1184_v31 = vld [vmem:[%s1522_s8 + $0x10] sm:$0xf] }
  0x4a   : > { %v430_v32 = vld [vmem:[#allocation2 + $0x10] sm:$0xff] }
  0x4b   : > { %v434_v33 = vpack.c.bf16 %v430_v32, %v430_v32  ;;  %v431_v36 = vld [vmem:[#allocation2] sm:$0xff] }
  0x4c   : > { %v432_v34 = vld [vmem:[#allocation2 + $0x18] sm:$0xff]  ;;  %v435_v37 = vpack.c.bf16 %v431_v36, %v431_v36 }
  0x4d   : > { %512 = vrot.lane.b32.xlu1 %v434_v33, %s1393_s10  ;;  %444 = vrot.lane.b32.xlu0 %v434_v33, %s1394_s12  ;;  %v436_v35 = vpack.c.bf16 %v432_v34, %v432_v34  ;;  %v433_v38 = vld [vmem:[#allocation2 + $0x8] sm:$0xff]  ;;  %v380_v40 = vsel %vm325_vm2, %v434_v33, 0 }
  0x4e   : > { %v437_v39 = vpack.c.bf16 %v433_v38, %v433_v38  ;;  %v383_v41 = vsel %vm325_vm2, %v435_v37, 0  ;;  %395 = vmatpush.bf16.msra.mxu0 %v380_v40 }
  0x4f   : > { %448 = vrot.lane.b32.xlu2 %v436_v35, %s1394_s12  ;;  %408 = vmatpush.bf16.msra.mxu1 %v383_v41  ;;  %v386_v42 = vsel %vm325_vm2, %v436_v35, 0 }
  0x50   : > { %421 = vmatpush.bf16.msra.mxu2 %v386_v42 }
  0x51   : > { %1169 = vmatmul.msk.bf16.vlgmr.msra.gmra.mxu0 %vm375_vm3, %v374_v43 }
  0x52   : > { %1170 = vmatmul.msk.bf16.vlgmr.msra.gmra.mxu1 %vm375_vm3, %v374_v43 }
  0x53   : > { %1171 = vmatmul.msk.bf16.vlgmr.msra.gmra.mxu2 %vm375_vm3, %v374_v43 }
  0x55   : > { %514 = vrot.lane.b32.xlu1 %v435_v37, %s1393_s10  ;;  %446 = vrot.lane.b32.xlu0 %v435_v37, %s1394_s12 }
  0x57   : > { %450 = vrot.lane.b32.xlu2 %v437_v39, %s1394_s12  ;;  %s1209_s12 = smul.u32 24, %s1506_s13  ;;  %s1034_s13 = scalar_lea.sflag [#allocation4], %s269_s30 }
  0x5d   : > { %582 = vrot.lane.b32.xlu1 %v435_v37, %s1395_s14  ;;  %516 = vrot.lane.b32.xlu0 %v436_v35, %s1393_s10 }
  0x5f   : > { %584 = vrot.lane.b32.xlu2 %v436_v35, %s1395_s14 }
  0x65   : > { %580 = vrot.lane.b32.xlu1 %v434_v33, %s1395_s14  ;;  %518 = vrot.lane.b32.xlu0 %v437_v39, %s1393_s10  ;;  %s1400_s10 = smov 90  }
  0x67   : > { %586 = vrot.lane.b32.xlu2 %v437_v39, %s1395_s14 }
  0x6d   : > { %654 = vrot.lane.b32.xlu1 %v437_v39, %s1396_s15  ;;  %652 = vrot.lane.b32.xlu0 %v436_v35, %s1396_s15 }
  0x6f   : > { %648 = vrot.lane.b32.xlu2 %v434_v33, %s1396_s15 }
  0x75   : > { %716 = vrot.lane.b32.xlu1 %v434_v33, %s1397_s16  ;;  %650 = vrot.lane.b32.xlu0 %v435_v37, %s1396_s15 }
  0x77   : > { %718 = vrot.lane.b32.xlu2 %v435_v37, %s1397_s16 }
  0x7d   : > { %786 = vrot.lane.b32.xlu1 %v435_v37, %s1398_s17  ;;  %784 = vrot.lane.b32.xlu0 %v434_v33, %s1398_s17 }
  0x7f   : > { %720 = vrot.lane.b32.xlu2 %v436_v35, %s1397_s16 }
  0x85   : > { %788 = vrot.lane.b32.xlu1 %v436_v35, %s1398_s17  ;;  %722 = vrot.lane.b32.xlu0 %v437_v39, %s1397_s16  ;;  %s290_s16 = scalar_lea.vmem %s1658_s4, %s1209_s12 }
  0x87   : > { %854 = vrot.lane.b32.xlu2 %v435_v37, %s1399_s9 }
  0x8d   : > { %856 = vrot.lane.b32.xlu0 %v436_v35, %s1399_s9  ;;  %790 = vrot.lane.b32.xlu1 %v437_v39, %s1398_s17 }
  0x8f   : > { %852 = vrot.lane.b32.xlu2 %v434_v33, %s1399_s9 }
  0x95   : > { %858 = vrot.lane.b32.xlu0 %v437_v39, %s1399_s9  ;;  %924 = vrot.lane.b32.xlu1 %v436_v35, %s1400_s10  ;;  %s1207_s9 = smul.u32 24, %s269_s30 }
  0x97   : > { %926 = vrot.lane.b32.xlu2 %v437_v39, %s1400_s10  ;;  %s271_s22 = scalar_lea.vmem [#allocation3], %s1207_s9  ;;  %s1316_s9 = scalar_lea.hbm %s1659_s5, 96 }
  0x98   : > { %s1049_s21 = sshll.u32 %s271_s22, 4  ;;  %s1050_s21 = int_to_ptr.vmem [resolvable:$true] %s1049_s21 }
  0x9d   : > { %922 = vrot.lane.b32.xlu1 %v435_v37, %s1400_s10  ;;  %920 = vrot.lane.b32.xlu0 %v434_v33, %s1400_s10 }
  0xa9   : > { %v449_v44 = vpop.permute.xlu2 %448 }
  0xb1   : > { %v451_v45 = vpop.permute.xlu2 %450 }
  0xb2   : > { %v455_v46 = vsel %vm452_vm4, %v449_v44, %v451_v45  ;;  %v1188_v45 = vld [vmem:[%s1522_s8 + $0x14] sm:$0xf] }
  0xb3   : > { %v466_v47 = vsel %vm325_vm2, %v455_v46, 0  ;;  %v1192_v46 = vld [vmem:[%s1522_s8 + $0x18] sm:$0xf] }
  0xb4   : > { %501 = vmatpush.bf16.msrb.mxu1 %v466_v47 }
  0xb7   : > { %1175 = vmatmul.msk.bf16.vlgmr.msrb.gmra.mxu1 %vm375_vm3, %v1172_v48 }
  0xb9   : > { %v585_v49 = vpop.permute.xlu2 %584 }
  0xbf   : > { %v513_v50 = vpop.permute.xlu1 %512  ;;  %v445_v51 = vpop.permute.xlu0 %444 }
  0xc1   : > { %v587_v52 = vpop.permute.xlu2 %586 }
  0xc2   : > { %v591_v63 = vsel %vm588_vm6, %v585_v49, %v587_v52 }
  0xc3   : > { %v602_v4 = vsel %vm325_vm2, %v591_v63, 0 }
  0xc7   : > { %v515_v53 = vpop.permute.xlu1 %514  ;;  %v447_v54 = vpop.permute.xlu0 %446 }
  0xc8   : > { %v453_v55 = vsel %vm452_vm4, %v445_v51, %v447_v54  ;;  %v454_v56 = vsel %vm452_vm4, %v447_v54, %v449_v44  ;;  %v521_v57 = vsel %vm520_vm5, %v513_v50, %v515_v53 }
  0xc9   : > { %v460_v58 = vsel %vm325_vm2, %v453_v55, 0  ;;  %v463_v59 = vsel %vm325_vm2, %v454_v56, 0  ;;  %v528_v60 = vsel %vm325_vm2, %v521_v57, 0  ;;  %v649_v61 = vpop.permute.xlu2 %648 }
  0xca   : > { %475 = vmatpush.bf16.msra.mxu3 %v460_v58  ;;  %488 = vmatpush.bf16.msrb.mxu0 %v463_v59 }
  0xcb   : > { %543 = vmatpush.bf16.msrb.mxu2 %v528_v60 }
  0xcd   : > { %1173 = vmatmul.msk.bf16.vlgmr.msra.gmra.mxu3 %vm375_vm3, %v1172_v48  ;;  %1174 = vmatmul.msk.bf16.vlgmr.msrb.gmra.mxu0 %vm375_vm3, %v1172_v48 }
  0xce   : > { %1177 = vmatmul.msk.bf16.vlgmr.msrb.gmra.mxu2 %vm375_vm3, %v1176_v62  ;;  %v397_v58 = vpop.f32.mrf.mxu0 }
  0xcf   : > { %v583_v0 = vpop.permute.xlu1 %582  ;;  %v517_v1 = vpop.permute.xlu0 %516 }
  0xd0   : > { %v590_v2 = vsel %vm588_vm6, %v583_v0, %v585_v49  ;;  %v522_v3 = vsel %vm520_vm5, %v515_v53, %v517_v1  ;;  %v410_v59 = vpop.f32.mrf.mxu1 }
  0xd1   : > { %v599_v5 = vsel %vm325_vm2, %v590_v2, 0  ;;  %v531_v6 = vsel %vm325_vm2, %v522_v3, 0  ;;  %v719_v7 = vpop.permute.xlu2 %718 }
  0xd2   : > { %556 = vmatpush.bf16.msrb.mxu3 %v531_v6  ;;  %624 = vmatpush.bf16.msra.mxu2 %v599_v5 }
  0xd6   : > { %637 = vmatpush.bf16.msra.mxu3 %v602_v4  ;;  %v399_v3 = vpop.f32.mrf.mxu0 }
  0xd7   : > { %v581_v8 = vpop.permute.xlu1 %580  ;;  %v519_v9 = vpop.permute.xlu0 %518 }
  0xd8   : > { %v589_v10 = vsel %vm588_vm6, %v581_v8, %v583_v0  ;;  %v523_v11 = vsel %vm520_vm5, %v517_v1, %v519_v9  ;;  %v412_v4 = vpop.f32.mrf.mxu1  ;;  %v1200_v9 = vld [vmem:[%s1522_s8 + $0x20] sm:$0xf] }
  0xd9   : > { %v596_v12 = vsel %vm325_vm2, %v589_v10, 0  ;;  %v534_v13 = vsel %vm325_vm2, %v523_v11, 0  ;;  %v721_v15 = vpop.permute.xlu2 %720  ;;  %v367_v10 = vld [vmem:[%s290_s16 + $0x10] sm:$0xff] }
  0xda   : > { %569 = vmatpush.bf16.msra.mxu0 %v534_v13  ;;  %611 = vmatpush.bf16.msra.mxu1 %v596_v12  ;;  %v726_v20 = vsel %vm724_vm8, %v719_v7, %v721_v15 }
  0xdb   : > { %v735_v26 = vsel %vm325_vm2, %v726_v20, 0 }
  0xdd   : > { %1178 = vmatmul.msk.bf16.vlgmr.msrb.gmra.mxu3 %vm375_vm3, %v1176_v62  ;;  %1179 = vmatmul.msk.bf16.vlgmr.msra.gmra.mxu0 %vm375_vm3, %v1176_v62  ;;  %v1196_v62 = vld [vmem:[%s1522_s8 + $0x1c] sm:$0xf]  ;;  %s1045_s8 = sadd.s32 %s1211_s27, %s1210_s26 }
  0xde   : > { %1181 = vmatmul.msk.bf16.vlgmr.msra.gmra.mxu1 %vm375_vm3, %v1180_v14  ;;  %1182 = vmatmul.msk.bf16.vlgmr.msra.gmra.mxu2 %vm375_vm3, %v1180_v14  ;;  %s1204_s10 = sshll.u32 %s1045_s8, 3 }
  0xdf   : > { %v655_v16 = vpop.permute.xlu1 %654  ;;  %v653_v17 = vpop.permute.xlu0 %652  ;;  %s1047_s15 = scalar_lea.hbm %s1659_s5, %s1204_s10 }
  0xe0   : > { %v659_v18 = vsel %vm656_vm7, %v653_v17, %v655_v16 }
  0xe1   : > { %v670_v19 = vsel %vm325_vm2, %v659_v18, 0  ;;  %v855_v27 = vpop.permute.xlu2 %854 }
  0xe2   : > { %705 = vmatpush.bf16.msrb.mxu2 %v670_v19  ;;  %v365_v19 = vld [vmem:[%s290_s16] sm:$0xff] }
  0xe3   : > { %v427_v20 = vadd.f32 %v397_v58, %v365_v19 }
  0xe7   : > { %v717_v21 = vpop.permute.xlu1 %716  ;;  %v651_v22 = vpop.permute.xlu0 %650 }
  0xe8   : > { %v657_v23 = vsel %vm656_vm7, %v649_v61, %v651_v22  ;;  %v658_v24 = vsel %vm656_vm7, %v651_v22, %v653_v17  ;;  %v725_v25 = vsel %vm724_vm8, %v717_v21, %v719_v7  ;;  %v423_v7 = vpop.f32.mrf.mxu2 }
  0xe9   : > { %v664_v28 = vsel %vm325_vm2, %v657_v23, 0  ;;  %v667_v29 = vsel %vm325_vm2, %v658_v24, 0  ;;  %v732_v30 = vsel %vm325_vm2, %v725_v25, 0  ;;  %v853_v36 = vpop.permute.xlu2 %852  ;;  %v429_v11 = vadd.f32 %v423_v7, %v367_v10 }
  0xea   : > { %679 = vmatpush.bf16.msrb.mxu0 %v664_v28  ;;  %692 = vmatpush.bf16.msrb.mxu1 %v667_v29  ;;  %v861_v37 = vsel %vm860_vm10, %v853_v36, %v855_v27 }
  0xeb   : > { %747 = vmatpush.bf16.msrb.mxu3 %v732_v30  ;;  %v868_v42 = vsel %vm325_vm2, %v861_v37, 0 }
  0xed   : > { %1183 = vmatmul.msk.bf16.vlgmr.msra.gmra.mxu3 %vm375_vm3, %v1180_v14  ;;  %1185 = vmatmul.msk.bf16.vlgmr.msrb.gmra.mxu0 %vm375_vm3, %v1184_v31 }
  0xee   : > { %760 = vmatpush.bf16.msra.mxu0 %v735_v26  ;;  %1186 = vmatmul.msk.bf16.vlgmr.msrb.gmra.mxu1 %vm375_vm3, %v1184_v31 }
  0xef   : > { %1187 = vmatmul.msk.bf16.vlgmr.msrb.gmra.mxu2 %vm375_vm3, %v1184_v31  ;;  %v787_v32 = vpop.permute.xlu1 %786  ;;  %v785_v33 = vpop.permute.xlu0 %784 }
  0xf0   : > { %v793_v34 = vsel %vm792_vm9, %v785_v33, %v787_v32  ;;  %v425_v8 = vpop.f32.mrf.mxu2 }
  0xf1   : > { %v800_v35 = vsel %vm325_vm2, %v793_v34, 0  ;;  %v927_v53 = vpop.permute.xlu2 %926 }
  0xf2   : > { %815 = vmatpush.bf16.msra.mxu2 %v800_v35 }
  0xf7   : > { %v789_v38 = vpop.permute.xlu1 %788  ;;  %v723_v39 = vpop.permute.xlu0 %722 }
  0xf8   : > { %v794_v40 = vsel %vm792_vm9, %v787_v32, %v789_v38  ;;  %v727_v41 = vsel %vm724_vm8, %v721_v15, %v723_v39  ;;  %v366_v15 = vld [vmem:[%s290_s16 + $0x8] sm:$0xff]  ;;  %s1051_s16 = sshll.u32 %s1047_s15, 4  ;;  %s1052_s16 = int_to_ptr.hbm [resolvable:$true] %s1051_s16 }
  0xf9   : > { %v803_v43 = vsel %vm325_vm2, %v794_v40, 0  ;;  %v738_v44 = vsel %vm325_vm2, %v727_v41, 0  ;;  %v428_v16 = vadd.f32 %v410_v59, %v366_v15  ;;  %s1310_s17 = sshra.s32 %s1052_s16, 4  ;;  %s1311_s17 = int_to_ptr.hbm [resolvable:$true] %s1310_s17 }
  0xfa   : > { %773 = vmatpush.bf16.msra.mxu1 %v738_v44  ;;  %828 = vmatpush.bf16.msra.mxu3 %v803_v43  ;;  %s1312_s26 = scalar_lea.hbm %s1311_s17, 24  ;;  %p1317_p4 = scmp.lt.s32.totalorder %s1311_s17, %s1659_s5 }
  0xfb   : > { %p1313_p0 = scmp.ne.s32.totalorder %s1311_s17, %s1312_s26  ;;  %p1318_p5 = scmp.lt.s32.totalorder %s1316_s9, %s1312_s26 }
  0xfd   : > { %1189 = vmatmul.msk.bf16.vlgmr.msrb.gmra.mxu3 %vm375_vm3, %v1188_v45  ;;  %1190 = vmatmul.msk.bf16.vlgmr.msra.gmra.mxu0 %vm375_vm3, %v1188_v45  ;;  %p1314_p1 = pnand %p1313_p0, %p1482_p3  ;;  %p1319_p6 = por %p1318_p5, %p1317_p4 }
  0xfe   : > { %883 = vmatpush.bf16.msrb.mxu1 %v868_v42 }
  0xff   : > { %1191 = vmatmul.msk.bf16.vlgmr.msra.gmra.mxu1 %vm375_vm3, %v1188_v45  ;;  %1193 = vmatmul.msk.bf16.vlgmr.msra.gmra.mxu2 %vm375_vm3, %v1192_v46  ;;  %v857_v47 = vpop.permute.xlu0 %856  ;;  %v791_v48 = vpop.permute.xlu1 %790  ;;  %p1315_p2 = pneg %p1314_p1 }
 0x100   : > { %v862_v49 = vsel %vm860_vm10, %v855_v27, %v857_v47  ;;  %v795_v50 = vsel %vm792_vm9, %v789_v38, %v791_v48 }
 0x101   : > { %v871_v51 = vsel %vm325_vm2, %v862_v49, 0  ;;  %v806_v52 = vsel %vm325_vm2, %v795_v50, 0  ;;  %p1320_p7 = pnand %p1319_p6, %p1315_p2 }
 0x102   : > { %841 = vmatpush.bf16.msrb.mxu0 %v806_v52  ;;  %896 = vmatpush.bf16.msrb.mxu2 %v871_v51 }
 0x107   : > { %v859_v54 = vpop.permute.xlu0 %858  ;;  %v925_v55 = vpop.permute.xlu1 %924 }
 0x108   : > { %v863_v56 = vsel %vm860_vm10, %v857_v47, %v859_v54  ;;  %v931_v57 = vsel %vm928_vm11, %v925_v55, %v927_v53 }
 0x109   : > { %v874_v60 = vsel %vm325_vm2, %v863_v56, 0  ;;  %v942_v61 = vsel %vm325_vm2, %v931_v57, 0 }
 0x10a   : > { %909 = vmatpush.bf16.msrb.mxu3 %v874_v60  ;;  %977 = vmatpush.bf16.msra.mxu2 %v942_v61 }
 0x10d   : > { %1194 = vmatmul.msk.bf16.vlgmr.msra.gmra.mxu3 %vm375_vm3, %v1192_v46  ;;  %1195 = vmatmul.msk.bf16.vlgmr.msrb.gmra.mxu0 %vm375_vm3, %v1192_v46 }
 0x10f   : > { %1197 = vmatmul.msk.bf16.vlgmr.msrb.gmra.mxu1 %vm375_vm3, %v1196_v62  ;;  %1198 = vmatmul.msk.bf16.vlgmr.msrb.gmra.mxu2 %vm375_vm3, %v1196_v62  ;;  %v923_v63 = vpop.permute.xlu1 %922  ;;  %v921_v0 = vpop.permute.xlu0 %920 }
 0x110   : > { %v930_v1 = vsel %vm928_vm11, %v923_v63, %v925_v55  ;;  %v929_v2 = vsel %vm928_vm11, %v921_v0, %v923_v63 }
 0x111   : > { %v939_v5 = vsel %vm325_vm2, %v930_v1, 0  ;;  %v936_v6 = vsel %vm325_vm2, %v929_v2, 0 }
 0x112   : > { %964 = vmatpush.bf16.msra.mxu1 %v939_v5  ;;  %951 = vmatpush.bf16.msra.mxu0 %v936_v6 }
 0x11d   : > { %1199 = vmatmul.msk.bf16.vlgmr.msrb.gmra.mxu3 %vm375_vm3, %v1196_v62  ;;  %1201 = vmatmul.msk.bf16.vlgmr.msra.gmra.mxu0 %vm375_vm3, %v1200_v9 }
 0x11f   : > { %1202 = vmatmul.msk.bf16.vlgmr.msra.gmra.mxu1 %vm375_vm3, %v1200_v9  ;;  %1203 = vmatmul.msk.bf16.vlgmr.msra.gmra.mxu2 %vm375_vm3, %v1200_v9  ;;  %v986_v9 = vld [vmem:[%s1655_s1] sm:$0x7] }
 0x134   : > { %v503_v12 = vpop.f32.mrf.mxu1 }
 0x135   : > { %v509_v13 = vadd.f32 %v503_v12, %v429_v11 }
 0x13c   : > { %v505_v14 = vpop.f32.mrf.mxu1 }
 0x14a   : > { %v490_v17 = vpop.f32.mrf.mxu0 }
 0x14b   : > { %v508_v18 = vadd.f32 %v490_v17, %v428_v16  ;;  %v988_v16 = vperm.slane %v986_v9, 0  ;;  %v989_v17 = vperm.slane %v986_v9, 1 }
 0x150   : > { %v477_v21 = vpop.f32.mrf.mxu3 }
 0x151   : > { %v507_v22 = vadd.f32 %v477_v21, %v427_v20  ;;  %v545_v23 = vpop.f32.mrf.mxu2 }
 0x152   : > { %v492_v24 = vpop.f32.mrf.mxu0 }
 0x153   : > { %v575_v25 = vadd.f32 %v545_v23, %v507_v22  ;;  %v990_v24 = vperm.slane %v986_v9, 2 }
 0x158   : > { %v479_v26 = vpop.f32.mrf.mxu3 }
 0x159   : > { %v547_v27 = vpop.f32.mrf.mxu2 }
 0x15a   : > { %v571_v28 = vpop.f32.mrf.mxu0 }
 0x15b   : > { %v613_v29 = vpop.f32.mrf.mxu1  ;;  %v577_v63 = vadd.f32 %v571_v28, %v509_v13 }
 0x15c   : > { %v643_v56 = vadd.f32 %v613_v29, %v575_v25 }
 0x160   : > { %v558_v30 = vpop.f32.mrf.mxu3 }
 0x161   : > { %v626_v31 = vpop.f32.mrf.mxu2  ;;  %v576_v54 = vadd.f32 %v558_v30, %v508_v18 }
 0x162   : > { %v573_v32 = vpop.f32.mrf.mxu0 }
 0x163   : > { %v615_v33 = vpop.f32.mrf.mxu1  ;;  %v644_v57 = vadd.f32 %v626_v31, %v576_v54 }
 0x168   : > { %v560_v34 = vpop.f32.mrf.mxu3 }
 0x169   : > { %v628_v35 = vpop.f32.mrf.mxu2 }
 0x16a   : > { %v681_v36 = vpop.f32.mrf.mxu0 }
 0x16b   : > { %v694_v37 = vpop.f32.mrf.mxu1  ;;  %v711_v60 = vadd.f32 %v681_v36, %v643_v56 }
 0x16c   : > { %v712_v61 = vadd.f32 %v694_v37, %v644_v57 }
 0x170   : > { %v639_v38 = vpop.f32.mrf.mxu3 }
 0x171   : > { %v645_v2 = vadd.f32 %v639_v38, %v577_v63 }
 0x172   : > { %v707_v39 = vpop.f32.mrf.mxu2  ;;  %v683_v40 = vpop.f32.mrf.mxu0 }
 0x173   : > { %v696_v41 = vpop.f32.mrf.mxu1  ;;  %v713_v7 = vadd.f32 %v707_v39, %v645_v2 }
 0x178   : > { %v641_v42 = vpop.f32.mrf.mxu3 }
 0x17a   : > { %v709_v43 = vpop.f32.mrf.mxu2  ;;  %v762_v44 = vpop.f32.mrf.mxu0 }
 0x17b   : > { %v780_v0 = vadd.f32 %v762_v44, %v712_v61 }
 0x17c   : > { %v775_v45 = vpop.f32.mrf.mxu1 }
 0x17d   : > { %v781_v14 = vadd.f32 %v775_v45, %v713_v7 }
 0x180   : > { %v749_v46 = vpop.f32.mrf.mxu3 }
 0x181   : > { %v779_v1 = vadd.f32 %v749_v46, %v711_v60 }
 0x182   : > { %v817_v47 = vpop.f32.mrf.mxu2  ;;  %v764_v48 = vpop.f32.mrf.mxu0 }
 0x183   : > { %v847_v5 = vadd.f32 %v817_v47, %v779_v1 }
 0x184   : > { %v777_v49 = vpop.f32.mrf.mxu1 }
 0x188   : > { %v751_v50 = vpop.f32.mrf.mxu3 }
 0x18a   : > { %v819_v51 = vpop.f32.mrf.mxu2  ;;  %v843_v52 = vpop.f32.mrf.mxu0 }
 0x18b   : > { %v849_v18 = vadd.f32 %v843_v52, %v781_v14 }
 0x18c   : > { %v885_v53 = vpop.f32.mrf.mxu1 }
 0x18d   : > { %v915_v10 = vadd.f32 %v885_v53, %v847_v5 }
 0x190   : > { %v830_v55 = vpop.f32.mrf.mxu3 }
 0x191   : > { %v848_v3 = vadd.f32 %v830_v55, %v780_v0 }
 0x192   : > { %v898_v58 = vpop.f32.mrf.mxu2  ;;  %v845_v59 = vpop.f32.mrf.mxu0 }
 0x193   : > { %v916_v11 = vadd.f32 %v898_v58, %v848_v3 }
 0x194   : > { %v887_v62 = vpop.f32.mrf.mxu1 }
 0x198   : > { %v832_v4 = vpop.f32.mrf.mxu3 }
 0x19a   : > { %v900_v6 = vpop.f32.mrf.mxu2  ;;  %v953_v8 = vpop.f32.mrf.mxu0 }
 0x19b   : > { %v983_v15 = vadd.f32 %v953_v8, %v915_v10 }
 0x19c   : > { %v966_v12 = vpop.f32.mrf.mxu1 }
 0x19d   : > { %v984_v13 = vadd.f32 %v966_v12, %v916_v11  ;;  %v994_v20 = vmul.f32 %v988_v16, %v983_v15 }
 0x19f   : > { %v995_v21 = vmul.f32 %v989_v17, %v984_v13 }
 0x1a0   : > { %v911_v19 = vpop.f32.mrf.mxu3 }
 0x1a1   : > { %v917_v22 = vadd.f32 %v911_v19, %v849_v18  ;;  %v997_v29 = vadd.f32 %v995_v21, %v994_v20 }
 0x1a2   : > { %v979_v23 = vpop.f32.mrf.mxu2  ;;  %v955_v25 = vpop.f32.mrf.mxu0 }
 0x1a3   : > { %v985_v26 = vadd.f32 %v979_v23, %v917_v22 }
 0x1a4   : > { %v968_v27 = vpop.f32.mrf.mxu1 }
 0x1a5   : > { %v996_v28 = vmul.f32 %v990_v24, %v985_v26 }
 0x1a7   : > { %v998_v30 = vadd.f32 %v997_v29, %v996_v28 }
 0x1a8   : > { %v913_v31 = vpop.f32.mrf.mxu3 }
 0x1a9   : > { %999 = vadd.xlane.f32.xlu2 %v998_v30 }
 0x1aa   : > { %v981_v32 = vpop.f32.mrf.mxu2 }
 0x21c   : > { %v1000_v33 = vpop.xlane.xlu2 %999 }
 0x21d   : > { %v1001_v34 = vmul.f32 0.00390625, %v1000_v33 }
 0x21f   : > { %v1002_v35 = vsub.f32 %v983_v15, %v1001_v34  ;;  %v1003_v36 = vsub.f32 %v984_v13, %v1001_v34  ;;  %v1004_v37 = vsub.f32 %v985_v26, %v1001_v34 }
 0x221   : > { %v1005_v38 = vmul.f32 %v1002_v35, %v988_v16  ;;  %v1006_v39 = vmul.f32 %v1003_v36, %v989_v17  ;;  %v1007_v40 = vmul.f32 %v1004_v37, %v990_v24 }
 0x223   : > { %v1008_v41 = vmul.f32 %v1005_v38, %v1005_v38  ;;  %v1009_v42 = vmul.f32 %v1006_v39, %v1006_v39  ;;  %v1010_v43 = vmul.f32 %v1007_v40, %v1007_v40 }
 0x225   : > { %v1011_v44 = vadd.f32 %v1009_v42, %v1008_v41 }
 0x227   : > { %v1012_v45 = vadd.f32 %v1011_v44, %v1010_v43 }
 0x229   : > { %1013 = vadd.xlane.f32.xlu0 %v1012_v45 }
 0x29c   : > { %v1014_v46 = vpop.xlane.xlu0 %1013 }
 0x29d   : > { %v1015_v47 = vmul.f32 0.00390625, %v1014_v46 }
 0x29f   : > { %v1016_v48 = vadd.f32 1e-05, %v1015_v47 }
 0x2a1   : > { %1294 = vrsqrt.f32 %v1016_v48  ;;  %vm1023_vm13 = vweird.f32 %v1016_v48 }
 0x2a7   : > { %v1295_v49 = vpop.eup %1294 }
 0x2a8   : > { %v1018_v50 = vmul.f32 %v1295_v49, %v1016_v48  ;;  %vm1024_vm12 = vweird.f32 %v1295_v49 }
 0x2a9   : > { %vm1025_vm14 = vmor %vm1023_vm13, %vm1024_vm12 }
 0x2aa   : > { %v1019_v51 = vmul.f32 %v1295_v49, %v1018_v50 }
 0x2ac   : > { %v1020_v52 = vmul.f32 0.5, %v1019_v51 }
 0x2ae   : > { %v1021_v53 = vsub.f32 1.5, %v1020_v52 }
 0x2b0   : > { %v1022_v54 = vmul.f32 %v1295_v49, %v1021_v53 }
 0x2b2   : > { %v1026_v55 = vsel %vm1025_vm14, %v1295_v49, %v1022_v54 }
 0x2b3   : > { %v1027_v56 = vmul.f32 %v1026_v55, %v1005_v38  ;;  %v1028_v57 = vmul.f32 %v1026_v55, %v1006_v39  ;;  %v1029_v58 = vmul.f32 %v1026_v55, %v1007_v40 }
 0x2b5   : > { %1030 = vst [vmem:[%s271_s22] sm:$0xff] %v1027_v56 }
 0x2b6   : > { %1031 = vst [vmem:[%s271_s22 + $0x8] sm:$0xff] %v1028_v57 }
 0x2b7   : > { %1032 = vst [vmem:[%s271_s22 + $0x10] sm:$0xff] %v1029_v58 }
 0x2b8   : > { %1323 = shalt.err (!%p1320_p7)
}
 0x2b9   : > { %1212 = dma.vmem_to_hbm [thread:$0]  (%p1482_p3), %s1050_s21, 384, %s1052_s16, %s1034_s13  }
 0x2ba PF: > { %p1218_p9 = scmp.ge.s32.totalorder %s1390_s25, 2  ;;  %s1063_s30 = sand.u32 1, %s1362_s18  }
 0x2bb   : > { %s1064_s14 = scalar_lea.sflag [#allocation4], %s1063_s30 }
 0x2bc   : > { %p1215_p10 = pnand %p1218_p9, %p1491_p8 }
 0x2be   : > { %p1216_p11 = pneg %p1215_p10 }
 0x2c0   : > { %1357 = dma.done.wait (%p1216_p11), %s1064_s14, 384  }
 0x2c1   : > { %1359 = vsyncadd (%p1216_p11), %s1064_s14, 4294966912  ;;  %s18_s25 = sadd.s32 1, %s1390_s25   ;;  %s1662_s18 = smov %s1366_s19 }
 0x2c2   : > { %p15_p12 = scmp.ge.s32.totalorder %s18_s25, 6   ;;  %s1663_s19 = smov %s1370_s20 }
 0x2c3   : > { %s1664_s20 = smov %s1500_s11  ;;  %s1665_s21 = smov %s1382_s23 }
 0x2c4   : > { %s1666_s22 = smov %s1386_s24  ;;  %s1667_s23 = smov %s1670_s28 }
 0x2c5   : > { %s1668_s24 = smov %s1674_s29  ;;  %17 = sbr.rel (!%p15_p12) target bundleno = 5 (0x5), region = 91 }
 0x2ca   :  { %1070 = vsyncpa [#allocation4], 1 }
 0x2cb   :  { %1072 = vsyncpa [#allocation4 + $0x1], 1 }

</bundles_post_ra>
